<compile_context>
chip_gen: v6e
topology: v6e:2x2x1
jax: 0.10.0
libtpu: 0.0.40
codegen_flags: <defaults>
</compile_context>

<pallas_src>
from functools import partial

import numpy as np
import jax
import jax.numpy as jnp
from jax.experimental import pallas as pl
from jax.experimental.pallas import tpu as pltpu

# ---- module hyper-parameters (SingleLayerGCN.__init__ defaults) ----
IN_DIM = 8            # in_dim
LATENT = 16           # latent_feat
EMB = 8               # embedding_size
GROUP = 128 // EMB    # graphs packed per 128-lane output row (= 16)
TILE_G_MAX = 256      # packed rows per grid step (256 rows = 4096 graphs, ~0.8 MiB/step)


def gcn_packed_kernel(x_ref, w1p_ref, b1p_ref, w2p_ref, b2p_ref, out_ref):
    """One tile of packed rows; each row carries GROUP graphs.

    h0  = relu(x_tile @ W1p + b1p)      # (TILE_G, GROUP*LATENT)
    out = h0 @ W2p + b2p                # (TILE_G, GROUP*EMB) == (TILE_G, 128)
    """
    h0 = jnp.maximum(
        jnp.dot(x_ref[...], w1p_ref[...], preferred_element_type=jnp.float32)
        + b1p_ref[...],
        0.0,
    )
    out_ref[...] = (
        jnp.dot(h0, w2p_ref[...], preferred_element_type=jnp.float32)
        + b2p_ref[...]
    )
    # NOTE: the module's GraphConv local-steps loop is intentionally omitted:
    # its result is discarded by the reference forward (the output is computed
    # from the pre-loop 'hidden'), so it is pure dead work here.


def prepare_gcn_params(w1, b1, w2, b2, *, nodes_per_graph, agent_index=0):
    """Build block-diagonal packed weights once, at parameter-setup time.

    Packs GROUP graphs per matmul row and folds the agent-node gather into W1
    (rows of W1p belonging to non-agent nodes are zero).
    """
    w1 = jnp.asarray(w1, jnp.float32)
    w2 = jnp.asarray(w2, jnp.float32)
    b1 = jnp.asarray(b1, jnp.float32).reshape(1, -1)
    b2 = jnp.asarray(b2, jnp.float32).reshape(1, -1)
    assert w1.shape == (IN_DIM, LATENT) and w2.shape == (LATENT, EMB)
    assert b1.shape == (1, LATENT) and b2.shape == (1, EMB)
    assert 0 <= agent_index < nodes_per_graph

    in_row = nodes_per_graph * IN_DIM
    # Per-graph slot: select the agent node's features and apply W1.
    w1_eff = jnp.zeros((in_row, LATENT), jnp.float32)
    w1_eff = w1_eff.at[agent_index * IN_DIM:(agent_index + 1) * IN_DIM, :].set(w1)

    eye = jnp.eye(GROUP, dtype=jnp.float32)
    w1p = jnp.kron(eye, w1_eff)        # (GROUP*in_row, GROUP*LATENT)
    w2p = jnp.kron(eye, w2)            # (GROUP*LATENT, GROUP*EMB) == (..., 128)
    b1p = jnp.tile(b1, (1, GROUP))     # (1, GROUP*LATENT)
    b2p = jnp.tile(b2, (1, GROUP))     # (1, 128)
    return w1p, b1p, w2p, b2p


def _choose_tile_g(num_groups):
    """Largest packed-row tile that still gives >=2 grid steps (v7x: 2 TCs)."""
    if num_groups <= 8:
        return num_groups                      # block dim == full array dim (legal)
    half = -(-num_groups // 2)                 # cdiv(num_groups, 2)
    tile = -(-half // 8) * 8                   # round up to sublane multiple of 8
    return min(TILE_G_MAX, tile)


@partial(jax.jit, static_argnames=("nodes_per_graph",))
def single_layer_gcn_forward(x, packed_params, *, nodes_per_graph):
    """Forward pass of SingleLayerGCN over a batched graph.

    x : (num_graphs * nodes_per_graph, IN_DIM) node features of the batched graph.
    Returns (num_graphs, EMB) embeddings of the agent node of every graph.
    """
    w1p, b1p, w2p, b2p = packed_params
    in_row = w1p.shape[0] // GROUP             # nodes_per_graph * IN_DIM
    h1 = w1p.shape[1]                          # GROUP * LATENT
    out_w = w2p.shape[1]                       # GROUP * EMB == 128
    assert in_row == nodes_per_graph * x.shape[1], "params/nodes_per_graph mismatch"

    num_graphs = x.shape[0] // nodes_per_graph
    num_groups = pl.cdiv(num_graphs, GROUP)
    padded_graphs = num_groups * GROUP
    if padded_graphs != num_graphs:            # only pad when ragged (one fused op)
        x = jnp.pad(x, ((0, (padded_graphs - num_graphs) * nodes_per_graph), (0, 0)))

    # Free row-major view: one row per group of GROUP graphs.
    xg = x.reshape(num_groups, GROUP * in_row)

    tile_g = _choose_tile_g(num_groups)
    grid = (pl.cdiv(num_groups, tile_g),)

    out_packed = pl.pallas_call(
        gcn_packed_kernel,
        out_shape=jax.ShapeDtypeStruct((num_groups, out_w), jnp.float32),
        grid=grid,
        in_specs=[
            pl.BlockSpec((tile_g, GROUP * in_row), lambda i: (i, 0)),  # node feats (tiled)
            pl.BlockSpec((GROUP * in_row, h1), lambda i: (0, 0)),      # W1 packed (whole)
            pl.BlockSpec((1, h1), lambda i: (0, 0)),                   # b1 packed
            pl.BlockSpec((h1, out_w), lambda i: (0, 0)),               # W2 packed
            pl.BlockSpec((1, out_w), lambda i: (0, 0)),                # b2 packed
        ],
        out_specs=pl.BlockSpec((tile_g, out_w), lambda i: (i, 0)),
        compiler_params=pltpu.CompilerParams(
            dimension_semantics=("parallel",)),        # grid shards across TCs on v7x
    )(xg, w1p, b1p, w2p, b2p)

    # Free views: unpack GROUP graphs per row, then drop ragged padding.
    return out_packed.reshape(padded_graphs, out_w // GROUP)[:num_graphs]


if __name__ == "__main__":
    key = jax.random.PRNGKey(0)
    kx, k1, k2 = jax.random.split(key, 3)

    # Batched graph: NUM_GRAPHS graphs, N nodes each (agent node = node 0).
    NUM_GRAPHS = 200     # not a multiple of 16 -> exercises ragged pad + 2-step grid
    N = 4
    BN = NUM_GRAPHS * N

    x = jax.random.normal(kx, (BN, IN_DIM), dtype=jnp.float32)
    w1 = jax.random.normal(k1, (IN_DIM, LATENT), dtype=jnp.float32) * 0.1
    b1 = 0.01 * jnp.arange(LATENT, dtype=jnp.float32)
    w2 = jax.random.normal(k2, (LATENT, EMB), dtype=jnp.float32) * 0.1
    b2 = 0.01 * jnp.arange(EMB, dtype=jnp.float32)
    # GraphConv weights are not constructed: the conv-loop result is discarded by
    # the reference forward, so they cannot affect the returned embedding.
    # TODO(synk): if dgl.node_subgraph is ever found to alias (not snapshot)
    # ndata['hidden'], the message-passing loop must be added back here.

    params = prepare_gcn_params(w1, b1, w2, b2, nodes_per_graph=N, agent_index=0)
    out = single_layer_gcn_forward(x, params, nodes_per_graph=N)
    out = jax.block_until_ready(out)

    # pure-numpy reference of the exact forward semantics
    xn = np.asarray(x)
    h0_ref = np.maximum(xn @ np.asarray(w1) + np.asarray(b1)[None, :], 0.0)
    ref = h0_ref[0::N] @ np.asarray(w2) + np.asarray(b2)[None, :]
    np.testing.assert_allclose(np.asarray(out), ref, rtol=1e-4, atol=1e-4)

    print("KERNEL_OK")
</pallas_src>

<mosaic_0001>
module attributes {stable_mosaic.version = 11 : i64} {
  func.func @gcn_packed_kernel(%arg0: i32, %arg1: memref<8x512xf32, #tpu.memory_space<vmem>>, %arg2: memref<512x256xf32, #tpu.memory_space<vmem>>, %arg3: memref<1x256xf32, #tpu.memory_space<vmem>>, %arg4: memref<256x128xf32, #tpu.memory_space<vmem>>, %arg5: memref<1x128xf32, #tpu.memory_space<vmem>>, %arg6: memref<8x128xf32, #tpu.memory_space<vmem>>) attributes {dimension_semantics = [#tpu.dimension_semantics<parallel>], iteration_bounds = array<i64: 2>, scalar_prefetch = 0 : i64, scratch_operands = 0 : i64, tpu.core_type = #tpu.core_type<tc>, window_params = [{transform_indices = @transform_0, window_bounds = array<i64: 8, 512>}, {pipeline_mode = #tpu.pipeline_mode<synchronous>, transform_indices = @transform_1, window_bounds = array<i64: 512, 256>}, {pipeline_mode = #tpu.pipeline_mode<synchronous>, transform_indices = @transform_2, window_bounds = array<i64: 1, 256>}, {pipeline_mode = #tpu.pipeline_mode<synchronous>, transform_indices = @transform_3, window_bounds = array<i64: 256, 128>}, {pipeline_mode = #tpu.pipeline_mode<synchronous>, transform_indices = @transform_4, window_bounds = array<i64: 1, 128>}, {transform_indices = @transform_5, window_bounds = array<i64: 8, 128>}]} {
    %c0 = arith.constant 0 : index
    %c0_0 = arith.constant 0 : index
    %0 = vector.load %arg1[%c0, %c0_0] : memref<8x512xf32, #tpu.memory_space<vmem>>, vector<8x512xf32>
    %c0_1 = arith.constant 0 : index
    %c0_2 = arith.constant 0 : index
    %1 = vector.load %arg2[%c0_1, %c0_2] : memref<512x256xf32, #tpu.memory_space<vmem>>, vector<512x256xf32>
    %cst = arith.constant dense<0.000000e+00> : vector<8x256xf32>
    %2 = tpu.matmul %0, %1, %cst {dimension_numbers = #tpu.dot_dimension_numbers<[1], [0], [0], [1], [0, 0, 1, 1], [], []>} : vector<8x512xf32>, vector<512x256xf32>, vector<8x256xf32> -> vector<8x256xf32>
    %c0_3 = arith.constant 0 : index
    %c0_4 = arith.constant 0 : index
    %3 = vector.load %arg3[%c0_3, %c0_4] : memref<1x256xf32, #tpu.memory_space<vmem>>, vector<1x256xf32>
    %4 = vector.broadcast %3 : vector<1x256xf32> to vector<8x256xf32>
    %5 = arith.addf %2, %4 : vector<8x256xf32>
    %cst_5 = arith.constant 0.000000e+00 : f32
    %6 = vector.broadcast %cst_5 : f32 to vector<8x256xf32>
    %7 = arith.maximumf %5, %6 : vector<8x256xf32>
    %c0_6 = arith.constant 0 : index
    %c0_7 = arith.constant 0 : index
    %8 = vector.load %arg4[%c0_6, %c0_7] : memref<256x128xf32, #tpu.memory_space<vmem>>, vector<256x128xf32>
    %cst_8 = arith.constant dense<0.000000e+00> : vector<8x128xf32>
    %9 = tpu.matmul %7, %8, %cst_8 {dimension_numbers = #tpu.dot_dimension_numbers<[1], [0], [0], [1], [0, 0, 1, 1], [], []>} : vector<8x256xf32>, vector<256x128xf32>, vector<8x128xf32> -> vector<8x128xf32>
    %c0_9 = arith.constant 0 : index
    %c0_10 = arith.constant 0 : index
    %10 = vector.load %arg5[%c0_9, %c0_10] : memref<1x128xf32, #tpu.memory_space<vmem>>, vector<1x128xf32>
    %11 = vector.broadcast %10 : vector<1x128xf32> to vector<8x128xf32>
    %12 = arith.addf %9, %11 : vector<8x128xf32>
    %c0_11 = arith.constant 0 : index
    %c0_12 = arith.constant 0 : index
    %13 = vector.load %arg6[%c0_11, %c0_12] : memref<8x128xf32, #tpu.memory_space<vmem>>, vector<8x128xf32>
    tpu.vector_store %arg6[%c0_11, %c0_12], %12 {strides = array<i32>} : memref<8x128xf32, #tpu.memory_space<vmem>>, vector<8x128xf32>,
    return
  }
  func.func @transform_0(%arg0: i32) -> (i32, i32) {
    %c0_i32 = arith.constant 0 : i32
    %c0_i32_0 = arith.constant 0 : i32
    return %arg0, %c0_i32 : i32, i32
  }
  func.func @transform_1(%arg0: i32) -> (i32, i32) {
    %c0_i32 = arith.constant 0 : i32
    %c0_i32_0 = arith.constant 0 : i32
    %c0_i32_1 = arith.constant 0 : i32
    return %c0_i32, %c0_i32_0 : i32, i32
  }
  func.func @transform_2(%arg0: i32) -> (i32, i32) {
    %c0_i32 = arith.constant 0 : i32
    %c0_i32_0 = arith.constant 0 : i32
    %c0_i32_1 = arith.constant 0 : i32
    return %c0_i32, %c0_i32_0 : i32, i32
  }
  func.func @transform_3(%arg0: i32) -> (i32, i32) {
    %c0_i32 = arith.constant 0 : i32
    %c0_i32_0 = arith.constant 0 : i32
    %c0_i32_1 = arith.constant 0 : i32
    return %c0_i32, %c0_i32_0 : i32, i32
  }
  func.func @transform_4(%arg0: i32) -> (i32, i32) {
    %c0_i32 = arith.constant 0 : i32
    %c0_i32_0 = arith.constant 0 : i32
    %c0_i32_1 = arith.constant 0 : i32
    return %c0_i32, %c0_i32_0 : i32, i32
  }
  func.func @transform_5(%arg0: i32) -> (i32, i32) {
    %c0_i32 = arith.constant 0 : i32
    %c0_i32_0 = arith.constant 0 : i32
    return %arg0, %c0_i32 : i32, i32
  }
}

</mosaic_0001>

<bundles_post_ra>
// kernel: single_layer_gcn_forward.1
= control target key start
LH: loop header
LB: loop body
LE: loop exit
PB: predicated region body
PF: predicated region fallthrough
CT: control target
= control target key end

     0   :  { %s767_s18 = smov 0   ;;  %s1284_s0 = inlined_call_operand.vmem [shape: f32[13,512], index: 0, kind: input, shape index: {}]   ;;  %s1285_s1 = inlined_call_operand.vmem [shape: f32[512,256], index: 1, kind: input, shape index: {}]   ;;  %s1286_s2 = inlined_call_operand.vmem [shape: f32[1,256], index: 2, kind: input, shape index: {}]   ;;  %s1287_s3 = inlined_call_operand.vmem [shape: f32[256,128], index: 3, kind: input, shape index: {}]   ;;  %s1288_s4 = inlined_call_operand.vmem [shape: f32[1,128], index: 4, kind: input, shape index: {}]   ;;  %s1289_s5 = inlined_call_operand.vmem [shape: f32[13,128], index: 5, kind: output, shape index: {}]  }
   0x1 LB: > { %s674_s19 = sadd.s32 4294967295, %s735_s18   ;;  %p678_p0 = scmp.ge.s32.totalorder %s735_s18, 1  ;;  %s735_s18 = sphi %s767_s18, %s15_s18  }
   0x2   : > { %p187_p1 = scmp.lt.s32.totalorder %s735_s18, 3 }
   0x4   : > { %p188_p2 = pnand %p678_p0, %p187_p1 }
   0x5   : > { %p1077_p3 = scmp.lt.s32.totalorder (!%p188_p2), %s674_s19, 1 }
   0x6   : > { %191 = sbr.rel (%p188_p2) target bundleno = 479 (0x1df), region = 40 }
   0xb   : > { %v258_v0 = vld [vmem:[%s1285_s1 + $0xf8] sm:$0xff]  ;;  %v257_v2 = vld [vmem:[%s1285_s1 + $0xf0] sm:$0xff]  ;;  %v256_v4 = vld [vmem:[%s1285_s1 + $0xe8] sm:$0xff]  ;;  %s1292_s19 = smov (!%p1077_p3, %s674_s19), 1 }
   0xc   : > { %v322_v1 = vld [vmem:[%s1285_s1 + $0x2f8] sm:$0xff]  ;;  %367 = vmatprep.subr.mxu0 %v258_v0  ;;  %v321_v3 = vld [vmem:[%s1285_s1 + $0x2f0] sm:$0xff]  ;;  %v320_v5 = vld [vmem:[%s1285_s1 + $0x2e8] sm:$0xff]  ;;  %s685_s23 = sshll.u32 %s1292_s19, 5  ;;  %s681_s25 = sshll.u32 %s1292_s19, 3 }
   0xd   : > { %438 = vmatprep.subr.mxu1 %v322_v1  ;;  %368 = vmatpush1.msra.mxu0 %v257_v2  ;;  %v255_v6 = vld [vmem:[%s1285_s1 + $0xe0] sm:$0xff]  ;;  %v254_v8 = vld [vmem:[%s1285_s1 + $0xd8] sm:$0xff]  ;;  %v253_v10 = vld [vmem:[%s1285_s1 + $0xd0] sm:$0xff]  ;;  %s218_s13 = scalar_lea.vmem %s1284_s0, %s685_s23  ;;  %s222_s30 = scalar_lea.vmem %s1289_s5, %s681_s25 }
   0xe   : > { %439 = vmatpush1.msra.mxu1 %v321_v3  ;;  %v319_v7 = vld [vmem:[%s1285_s1 + $0x2e0] sm:$0xff]  ;;  %369 = vmatprep.subr.mxu0 %v256_v4  ;;  %v318_v9 = vld [vmem:[%s1285_s1 + $0x2d8] sm:$0xff]  ;;  %v317_v11 = vld [vmem:[%s1285_s1 + $0x2d0] sm:$0xff] }
   0xf   : > { %440 = vmatprep.subr.mxu1 %v320_v5  ;;  %370 = vmatpush1.msra.mxu0 %v255_v6  ;;  %v252_v12 = vld [vmem:[%s1285_s1 + $0xc8] sm:$0xff]  ;;  %v251_v14 = vld [vmem:[%s1285_s1 + $0xc0] sm:$0xff]  ;;  %v250_v16 = vld [vmem:[%s1285_s1 + $0xb8] sm:$0xff] }
  0x10   : > { %441 = vmatpush1.msra.mxu1 %v319_v7  ;;  %v316_v13 = vld [vmem:[%s1285_s1 + $0x2c8] sm:$0xff]  ;;  %371 = vmatprep.subr.mxu0 %v254_v8  ;;  %v315_v15 = vld [vmem:[%s1285_s1 + $0x2c0] sm:$0xff]  ;;  %v314_v17 = vld [vmem:[%s1285_s1 + $0x2b8] sm:$0xff] }
  0x11   : > { %442 = vmatprep.subr.mxu1 %v318_v9  ;;  %372 = vmatpush1.msra.mxu0 %v253_v10  ;;  %v249_v18 = vld [vmem:[%s1285_s1 + $0xb0] sm:$0xff]  ;;  %v248_v20 = vld [vmem:[%s1285_s1 + $0xa8] sm:$0xff]  ;;  %v247_v22 = vld [vmem:[%s1285_s1 + $0xa0] sm:$0xff] }
  0x12   : > { %443 = vmatpush1.msra.mxu1 %v317_v11  ;;  %373 = vmatprep.subr.mxu0 %v252_v12  ;;  %v313_v19 = vld [vmem:[%s1285_s1 + $0x2b0] sm:$0xff]  ;;  %v312_v21 = vld [vmem:[%s1285_s1 + $0x2a8] sm:$0xff]  ;;  %v311_v23 = vld [vmem:[%s1285_s1 + $0x2a0] sm:$0xff] }
  0x13   : > { %444 = vmatprep.subr.mxu1 %v316_v13  ;;  %374 = vmatpush1.msra.mxu0 %v251_v14  ;;  %v246_v24 = vld [vmem:[%s1285_s1 + $0x98] sm:$0xff]  ;;  %v245_v26 = vld [vmem:[%s1285_s1 + $0x90] sm:$0xff]  ;;  %v244_v28 = vld [vmem:[%s1285_s1 + $0x88] sm:$0xff] }
  0x14   : > { %445 = vmatpush1.msra.mxu1 %v315_v15  ;;  %375 = vmatprep.subr.mxu0 %v250_v16  ;;  %v310_v25 = vld [vmem:[%s1285_s1 + $0x298] sm:$0xff]  ;;  %v309_v27 = vld [vmem:[%s1285_s1 + $0x290] sm:$0xff]  ;;  %v308_v29 = vld [vmem:[%s1285_s1 + $0x288] sm:$0xff] }
  0x15   : > { %446 = vmatprep.subr.mxu1 %v314_v17  ;;  %376 = vmatpush1.msra.mxu0 %v249_v18  ;;  %v243_v30 = vld [vmem:[%s1285_s1 + $0x80] sm:$0xff]  ;;  %v242_v32 = vld [vmem:[%s1285_s1 + $0x78] sm:$0xff]  ;;  %v241_v34 = vld [vmem:[%s1285_s1 + $0x70] sm:$0xff] }
  0x16   : > { %447 = vmatpush1.msra.mxu1 %v313_v19  ;;  %377 = vmatprep.subr.mxu0 %v248_v20  ;;  %v307_v31 = vld [vmem:[%s1285_s1 + $0x280] sm:$0xff]  ;;  %v306_v33 = vld [vmem:[%s1285_s1 + $0x278] sm:$0xff]  ;;  %v305_v35 = vld [vmem:[%s1285_s1 + $0x270] sm:$0xff] }
  0x17   : > { %448 = vmatprep.subr.mxu1 %v312_v21  ;;  %378 = vmatpush1.msra.mxu0 %v247_v22  ;;  %v240_v36 = vld [vmem:[%s1285_s1 + $0x68] sm:$0xff]  ;;  %v239_v38 = vld [vmem:[%s1285_s1 + $0x60] sm:$0xff]  ;;  %v238_v40 = vld [vmem:[%s1285_s1 + $0x58] sm:$0xff] }
  0x18   : > { %449 = vmatpush1.msra.mxu1 %v311_v23  ;;  %379 = vmatprep.subr.mxu0 %v246_v24  ;;  %v304_v37 = vld [vmem:[%s1285_s1 + $0x268] sm:$0xff]  ;;  %v303_v39 = vld [vmem:[%s1285_s1 + $0x260] sm:$0xff]  ;;  %v302_v41 = vld [vmem:[%s1285_s1 + $0x258] sm:$0xff] }
  0x19   : > { %450 = vmatprep.subr.mxu1 %v310_v25  ;;  %380 = vmatpush1.msra.mxu0 %v245_v26  ;;  %v237_v42 = vld [vmem:[%s1285_s1 + $0x50] sm:$0xff]  ;;  %v236_v44 = vld [vmem:[%s1285_s1 + $0x48] sm:$0xff]  ;;  %v235_v46 = vld [vmem:[%s1285_s1 + $0x40] sm:$0xff] }
  0x1a   : > { %451 = vmatpush1.msra.mxu1 %v309_v27  ;;  %381 = vmatprep.subr.mxu0 %v244_v28  ;;  %v301_v43 = vld [vmem:[%s1285_s1 + $0x250] sm:$0xff]  ;;  %v300_v45 = vld [vmem:[%s1285_s1 + $0x248] sm:$0xff]  ;;  %v299_v47 = vld [vmem:[%s1285_s1 + $0x240] sm:$0xff] }
  0x1b   : > { %452 = vmatprep.subr.mxu1 %v308_v29  ;;  %382 = vmatpush1.msra.mxu0 %v243_v30  ;;  %v234_v48 = vld [vmem:[%s1285_s1 + $0x38] sm:$0xff]  ;;  %v233_v50 = vld [vmem:[%s1285_s1 + $0x30] sm:$0xff]  ;;  %v232_v52 = vld [vmem:[%s1285_s1 + $0x28] sm:$0xff] }
  0x1c   : > { %453 = vmatpush1.msra.mxu1 %v307_v31  ;;  %383 = vmatprep.subr.mxu0 %v242_v32  ;;  %v298_v49 = vld [vmem:[%s1285_s1 + $0x238] sm:$0xff]  ;;  %v297_v51 = vld [vmem:[%s1285_s1 + $0x230] sm:$0xff]  ;;  %v296_v53 = vld [vmem:[%s1285_s1 + $0x228] sm:$0xff] }
  0x1d   : > { %454 = vmatprep.subr.mxu1 %v306_v33  ;;  %384 = vmatpush1.msra.mxu0 %v241_v34  ;;  %v231_v54 = vld [vmem:[%s1285_s1 + $0x20] sm:$0xff]  ;;  %v230_v56 = vld [vmem:[%s1285_s1 + $0x18] sm:$0xff]  ;;  %v229_v58 = vld [vmem:[%s1285_s1 + $0x10] sm:$0xff] }
  0x1e   : > { %455 = vmatpush1.msra.mxu1 %v305_v35  ;;  %385 = vmatprep.subr.mxu0 %v240_v36  ;;  %v295_v55 = vld [vmem:[%s1285_s1 + $0x220] sm:$0xff]  ;;  %v294_v57 = vld [vmem:[%s1285_s1 + $0x218] sm:$0xff]  ;;  %v293_v59 = vld [vmem:[%s1285_s1 + $0x210] sm:$0xff] }
  0x1f   : > { %456 = vmatprep.subr.mxu1 %v304_v37  ;;  %386 = vmatpush1.msra.mxu0 %v239_v38  ;;  %v228_v60 = vld [vmem:[%s1285_s1 + $0x8] sm:$0xff]  ;;  %v227_v62 = vld [vmem:[%s1285_s1] sm:$0xff]  ;;  %v290_v0 = vld [vmem:[%s1285_s1 + $0x1f8] sm:$0xff] }
  0x20   : > { %457 = vmatpush1.msra.mxu1 %v303_v39  ;;  %387 = vmatprep.subr.mxu0 %v238_v40  ;;  %v292_v61 = vld [vmem:[%s1285_s1 + $0x208] sm:$0xff]  ;;  %v291_v63 = vld [vmem:[%s1285_s1 + $0x200] sm:$0xff]  ;;  %v354_v1 = vld [vmem:[%s1285_s1 + $0x3f8] sm:$0xff] }
  0x21   : > { %458 = vmatprep.subr.mxu1 %v302_v41  ;;  %388 = vmatpush1.msra.mxu0 %v237_v42  ;;  %v289_v2 = vld [vmem:[%s1285_s1 + $0x1f0] sm:$0xff]  ;;  %v288_v4 = vld [vmem:[%s1285_s1 + $0x1e8] sm:$0xff]  ;;  %v287_v6 = vld [vmem:[%s1285_s1 + $0x1e0] sm:$0xff] }
  0x22   : > { %459 = vmatpush1.msra.mxu1 %v301_v43  ;;  %389 = vmatprep.subr.mxu0 %v236_v44  ;;  %v353_v3 = vld [vmem:[%s1285_s1 + $0x3f0] sm:$0xff]  ;;  %v352_v5 = vld [vmem:[%s1285_s1 + $0x3e8] sm:$0xff]  ;;  %v351_v7 = vld [vmem:[%s1285_s1 + $0x3e0] sm:$0xff] }
  0x23   : > { %460 = vmatprep.subr.mxu1 %v300_v45  ;;  %390 = vmatpush1.msra.mxu0 %v235_v46  ;;  %v286_v8 = vld [vmem:[%s1285_s1 + $0x1d8] sm:$0xff]  ;;  %v285_v10 = vld [vmem:[%s1285_s1 + $0x1d0] sm:$0xff]  ;;  %v284_v12 = vld [vmem:[%s1285_s1 + $0x1c8] sm:$0xff] }
  0x24   : > { %461 = vmatpush1.msra.mxu1 %v299_v47  ;;  %391 = vmatprep.subr.mxu0 %v234_v48  ;;  %v350_v9 = vld [vmem:[%s1285_s1 + $0x3d8] sm:$0xff]  ;;  %v349_v11 = vld [vmem:[%s1285_s1 + $0x3d0] sm:$0xff]  ;;  %v348_v13 = vld [vmem:[%s1285_s1 + $0x3c8] sm:$0xff] }
  0x25   : > { %462 = vmatprep.subr.mxu1 %v298_v49  ;;  %392 = vmatpush1.msra.mxu0 %v233_v50  ;;  %v283_v14 = vld [vmem:[%s1285_s1 + $0x1c0] sm:$0xff]  ;;  %v282_v16 = vld [vmem:[%s1285_s1 + $0x1b8] sm:$0xff]  ;;  %v281_v18 = vld [vmem:[%s1285_s1 + $0x1b0] sm:$0xff] }
  0x26   : > { %463 = vmatpush1.msra.mxu1 %v297_v51  ;;  %393 = vmatprep.subr.mxu0 %v232_v52  ;;  %v347_v15 = vld [vmem:[%s1285_s1 + $0x3c0] sm:$0xff]  ;;  %v346_v17 = vld [vmem:[%s1285_s1 + $0x3b8] sm:$0xff]  ;;  %v345_v19 = vld [vmem:[%s1285_s1 + $0x3b0] sm:$0xff] }
  0x27   : > { %464 = vmatprep.subr.mxu1 %v296_v53  ;;  %394 = vmatpush1.msra.mxu0 %v231_v54  ;;  %v280_v20 = vld [vmem:[%s1285_s1 + $0x1a8] sm:$0xff]  ;;  %v279_v22 = vld [vmem:[%s1285_s1 + $0x1a0] sm:$0xff]  ;;  %v278_v24 = vld [vmem:[%s1285_s1 + $0x198] sm:$0xff] }
  0x28   : > { %465 = vmatpush1.msra.mxu1 %v295_v55  ;;  %395 = vmatprep.subr.mxu0 %v230_v56  ;;  %v344_v21 = vld [vmem:[%s1285_s1 + $0x3a8] sm:$0xff]  ;;  %v343_v23 = vld [vmem:[%s1285_s1 + $0x3a0] sm:$0xff]  ;;  %v342_v25 = vld [vmem:[%s1285_s1 + $0x398] sm:$0xff] }
  0x29   : > { %466 = vmatprep.subr.mxu1 %v294_v57  ;;  %396 = vmatpush1.msra.mxu0 %v229_v58  ;;  %v277_v26 = vld [vmem:[%s1285_s1 + $0x190] sm:$0xff]  ;;  %v276_v28 = vld [vmem:[%s1285_s1 + $0x188] sm:$0xff]  ;;  %v275_v30 = vld [vmem:[%s1285_s1 + $0x180] sm:$0xff] }
  0x2a   : > { %467 = vmatpush1.msra.mxu1 %v293_v59  ;;  %397 = vmatprep.subr.mxu0 %v228_v60  ;;  %v341_v27 = vld [vmem:[%s1285_s1 + $0x390] sm:$0xff]  ;;  %v340_v29 = vld [vmem:[%s1285_s1 + $0x388] sm:$0xff]  ;;  %v339_v31 = vld [vmem:[%s1285_s1 + $0x380] sm:$0xff] }
  0x2b   : > { %468 = vmatprep.subr.mxu1 %v292_v61  ;;  %398 = vmatpush1.msra.mxu0 %v227_v62  ;;  %v274_v32 = vld [vmem:[%s1285_s1 + $0x178] sm:$0xff]  ;;  %v273_v34 = vld [vmem:[%s1285_s1 + $0x170] sm:$0xff]  ;;  %v272_v36 = vld [vmem:[%s1285_s1 + $0x168] sm:$0xff] }
  0x2c   : > { %469 = vmatpush1.msra.mxu1 %v291_v63  ;;  %399 = vmatprep.subr.mxu0 %v290_v0  ;;  %v338_v33 = vld [vmem:[%s1285_s1 + $0x378] sm:$0xff]  ;;  %v337_v35 = vld [vmem:[%s1285_s1 + $0x370] sm:$0xff]  ;;  %v336_v37 = vld [vmem:[%s1285_s1 + $0x368] sm:$0xff] }
  0x2d   : > { %470 = vmatprep.subr.mxu1 %v354_v1  ;;  %400 = vmatpush2.msra.mxu0 %v289_v2  ;;  %v271_v38 = vld [vmem:[%s1285_s1 + $0x160] sm:$0xff]  ;;  %v270_v40 = vld [vmem:[%s1285_s1 + $0x158] sm:$0xff]  ;;  %v269_v42 = vld [vmem:[%s1285_s1 + $0x150] sm:$0xff] }
  0x2e   : > { %471 = vmatpush2.msra.mxu1 %v353_v3  ;;  %401 = vmatprep.subr.mxu0 %v288_v4  ;;  %v335_v39 = vld [vmem:[%s1285_s1 + $0x360] sm:$0xff]  ;;  %v334_v41 = vld [vmem:[%s1285_s1 + $0x358] sm:$0xff]  ;;  %v333_v43 = vld [vmem:[%s1285_s1 + $0x350] sm:$0xff] }
  0x2f   : > { %472 = vmatprep.subr.mxu1 %v352_v5  ;;  %402 = vmatpush2.msra.mxu0 %v287_v6  ;;  %v268_v44 = vld [vmem:[%s1285_s1 + $0x148] sm:$0xff]  ;;  %v267_v46 = vld [vmem:[%s1285_s1 + $0x140] sm:$0xff]  ;;  %v266_v48 = vld [vmem:[%s1285_s1 + $0x138] sm:$0xff] }
  0x30   : > { %473 = vmatpush2.msra.mxu1 %v351_v7  ;;  %403 = vmatprep.subr.mxu0 %v286_v8  ;;  %v332_v45 = vld [vmem:[%s1285_s1 + $0x348] sm:$0xff]  ;;  %v331_v47 = vld [vmem:[%s1285_s1 + $0x340] sm:$0xff]  ;;  %v330_v49 = vld [vmem:[%s1285_s1 + $0x338] sm:$0xff] }
  0x31   : > { %474 = vmatprep.subr.mxu1 %v350_v9  ;;  %404 = vmatpush2.msra.mxu0 %v285_v10  ;;  %v265_v50 = vld [vmem:[%s1285_s1 + $0x130] sm:$0xff]  ;;  %v264_v52 = vld [vmem:[%s1285_s1 + $0x128] sm:$0xff]  ;;  %v263_v54 = vld [vmem:[%s1285_s1 + $0x120] sm:$0xff] }
  0x32   : > { %475 = vmatpush2.msra.mxu1 %v349_v11  ;;  %405 = vmatprep.subr.mxu0 %v284_v12  ;;  %v329_v51 = vld [vmem:[%s1285_s1 + $0x330] sm:$0xff]  ;;  %v328_v53 = vld [vmem:[%s1285_s1 + $0x328] sm:$0xff]  ;;  %v327_v55 = vld [vmem:[%s1285_s1 + $0x320] sm:$0xff] }
  0x33   : > { %476 = vmatprep.subr.mxu1 %v348_v13  ;;  %406 = vmatpush2.msra.mxu0 %v283_v14  ;;  %v262_v56 = vld [vmem:[%s1285_s1 + $0x118] sm:$0xff]  ;;  %v261_v58 = vld [vmem:[%s1285_s1 + $0x110] sm:$0xff]  ;;  %v260_v60 = vld [vmem:[%s1285_s1 + $0x108] sm:$0xff] }
  0x34   : > { %477 = vmatpush2.msra.mxu1 %v347_v15  ;;  %407 = vmatprep.subr.mxu0 %v282_v16  ;;  %v326_v57 = vld [vmem:[%s1285_s1 + $0x318] sm:$0xff]  ;;  %v325_v59 = vld [vmem:[%s1285_s1 + $0x310] sm:$0xff]  ;;  %v324_v61 = vld [vmem:[%s1285_s1 + $0x308] sm:$0xff] }
  0x35   : > { %478 = vmatprep.subr.mxu1 %v346_v17  ;;  %408 = vmatpush2.msra.mxu0 %v281_v18  ;;  %v259_v62 = vld [vmem:[%s1285_s1 + $0x100] sm:$0xff]  ;;  %v224_v63 = vld [vmem:[%s218_s13 + $0x8] sm:$0xff]  ;;  %v226_v1 = vld [vmem:[%s218_s13 + $0x18] sm:$0xff] }
  0x36   : > { %479 = vmatpush2.msra.mxu1 %v345_v19  ;;  %409 = vmatprep.subr.mxu0 %v280_v20  ;;  %v323_v0 = vld [vmem:[%s1285_s1 + $0x300] sm:$0xff]  ;;  %v225_v3 = vld [vmem:[%s218_s13 + $0x10] sm:$0xff]  ;;  %v542_v4 = vld [vmem:[%s1287_s3 + $0xf8] sm:$0xff] }
  0x37   : > { %480 = vmatprep.subr.mxu1 %v344_v21  ;;  %410 = vmatpush2.msra.mxu0 %v279_v22  ;;  %v223_v2 = vld [vmem:[%s218_s13] sm:$0xff]  ;;  %v526_v5 = vld [vmem:[%s1287_s3 + $0x78] sm:$0xff]  ;;  %v541_v6 = vld [vmem:[%s1287_s3 + $0xf0] sm:$0xff] }
  0x38   : > { %481 = vmatpush2.msra.mxu1 %v343_v23  ;;  %411 = vmatprep.subr.mxu0 %v278_v24  ;;  %v525_v7 = vld [vmem:[%s1287_s3 + $0x70] sm:$0xff]  ;;  %v540_v8 = vld [vmem:[%s1287_s3 + $0xe8] sm:$0xff]  ;;  %v539_v10 = vld [vmem:[%s1287_s3 + $0xe0] sm:$0xff] }
  0x39   : > { %482 = vmatprep.subr.mxu1 %v342_v25  ;;  %412 = vmatpush2.msra.mxu0 %v277_v26  ;;  %v524_v9 = vld [vmem:[%s1287_s3 + $0x68] sm:$0xff]  ;;  %v523_v11 = vld [vmem:[%s1287_s3 + $0x60] sm:$0xff]  ;;  %v538_v12 = vld [vmem:[%s1287_s3 + $0xd8] sm:$0xff] }
  0x3a   : > { %483 = vmatpush2.msra.mxu1 %v341_v27  ;;  %413 = vmatprep.subr.mxu0 %v276_v28  ;;  %v522_v13 = vld [vmem:[%s1287_s3 + $0x58] sm:$0xff]  ;;  %v537_v14 = vld [vmem:[%s1287_s3 + $0xd0] sm:$0xff]  ;;  %v536_v16 = vld [vmem:[%s1287_s3 + $0xc8] sm:$0xff] }
  0x3b   : > { %484 = vmatprep.subr.mxu1 %v340_v29  ;;  %414 = vmatpush2.msra.mxu0 %v275_v30  ;;  %v521_v15 = vld [vmem:[%s1287_s3 + $0x50] sm:$0xff]  ;;  %v520_v17 = vld [vmem:[%s1287_s3 + $0x48] sm:$0xff]  ;;  %v535_v18 = vld [vmem:[%s1287_s3 + $0xc0] sm:$0xff] }
  0x3c   : > { %485 = vmatpush2.msra.mxu1 %v339_v31  ;;  %415 = vmatprep.subr.mxu0 %v274_v32  ;;  %v519_v19 = vld [vmem:[%s1287_s3 + $0x40] sm:$0xff]  ;;  %v534_v20 = vld [vmem:[%s1287_s3 + $0xb8] sm:$0xff]  ;;  %v533_v22 = vld [vmem:[%s1287_s3 + $0xb0] sm:$0xff] }
  0x3d   : > { %486 = vmatprep.subr.mxu1 %v338_v33  ;;  %416 = vmatpush2.msra.mxu0 %v273_v34  ;;  %v518_v21 = vld [vmem:[%s1287_s3 + $0x38] sm:$0xff]  ;;  %v517_v23 = vld [vmem:[%s1287_s3 + $0x30] sm:$0xff]  ;;  %v532_v24 = vld [vmem:[%s1287_s3 + $0xa8] sm:$0xff] }
  0x3e   : > { %487 = vmatpush2.msra.mxu1 %v337_v35  ;;  %417 = vmatprep.subr.mxu0 %v272_v36  ;;  %v516_v25 = vld [vmem:[%s1287_s3 + $0x28] sm:$0xff]  ;;  %v531_v26 = vld [vmem:[%s1287_s3 + $0xa0] sm:$0xff]  ;;  %v530_v28 = vld [vmem:[%s1287_s3 + $0x98] sm:$0xff]  ;;  %v357_v36 = vlaneseq }
  0x3f   : > { %488 = vmatprep.subr.mxu1 %v336_v37  ;;  %418 = vmatpush2.msra.mxu0 %v271_v38  ;;  %v515_v27 = vld [vmem:[%s1287_s3 + $0x20] sm:$0xff]  ;;  %v514_v29 = vld [vmem:[%s1287_s3 + $0x18] sm:$0xff]  ;;  %v529_v30 = vld [vmem:[%s1287_s3 + $0x90] sm:$0xff] }
  0x40   : > { %489 = vmatpush2.msra.mxu1 %v335_v39  ;;  %419 = vmatprep.subr.mxu0 %v270_v40  ;;  %v513_v31 = vld [vmem:[%s1287_s3 + $0x10] sm:$0xff]  ;;  %v528_v32 = vld [vmem:[%s1287_s3 + $0x88] sm:$0xff]  ;;  %v527_v34 = vld [vmem:[%s1287_s3 + $0x80] sm:$0xff]  ;;  %v358_v37 = vshrl.u32 %v357_v36, 7 }
  0x41   : > { %490 = vmatprep.subr.mxu1 %v334_v41  ;;  %420 = vmatpush2.msra.mxu0 %v269_v42  ;;  %v512_v33 = vld [vmem:[%s1287_s3 + $0x8] sm:$0xff]  ;;  %v511_v35 = vld [vmem:[%s1287_s3] sm:$0xff] }
  0x42   : > { %491 = vmatpush2.msra.mxu1 %v333_v43  ;;  %421 = vmatprep.subr.mxu0 %v268_v44  ;;  %v359_v38 = vsub.s32 0, %v358_v37  ;;  %v355_v39 = vld [vmem:[%s1286_s2] sm:$0x3]  ;;  %v363_v40 = vsub.s32 1, %v358_v37 }
  0x43   : > { %492 = vmatprep.subr.mxu1 %v332_v45  ;;  %422 = vmatpush2.msra.mxu0 %v267_v46 }
  0x44   : > { %493 = vmatpush2.msra.mxu1 %v331_v47  ;;  %423 = vmatprep.subr.mxu0 %v266_v48  ;;  %v360_v41 = vrot.slane %v355_v39, %v359_v38  ;;  %v364_v42 = vrot.slane %v355_v39, %v363_v40 }
  0x45   : > { %494 = vmatprep.subr.mxu1 %v330_v49  ;;  %424 = vmatpush2.msra.mxu0 %v265_v50 }
  0x46   : > { %495 = vmatpush2.msra.mxu1 %v329_v51  ;;  %425 = vmatprep.subr.mxu0 %v264_v52 }
  0x47   : > { %496 = vmatprep.subr.mxu1 %v328_v53  ;;  %426 = vmatpush2.msra.mxu0 %v263_v54  ;;  %v682_v54 = vld [vmem:[%s1288_s4] ss:$0 sm:$0xff] }
  0x48   : > { %497 = vmatpush2.msra.mxu1 %v327_v55  ;;  %427 = vmatprep.subr.mxu0 %v262_v56 }
  0x49   : > { %498 = vmatprep.subr.mxu1 %v326_v57  ;;  %428 = vmatpush2.msra.mxu0 %v261_v58 }
  0x4a   : > { %499 = vmatpush2.msra.mxu1 %v325_v59  ;;  %429 = vmatprep.subr.mxu0 %v260_v60 }
  0x4b   : > { %500 = vmatprep.subr.mxu1 %v324_v61  ;;  %430 = vmatpush2.msra.mxu0 %v259_v62 }
  0x4c   : > { %431 = vmatprep.mubr.f32.mxu0 %v224_v63  ;;  %501 = vmatpush2.msra.mxu1 %v323_v0 }
  0x4d   : > { %502 = vmatprep.mubr.f32.mxu1 %v226_v1  ;;  %432 = vmatmul.mubr.f32.vlgmr.msra.gmra.mxu0 %v223_v2 }
  0x4e   : > { %503 = vmatmul.mubr.f32.vlgmr.msra.gmra.mxu1 %v225_v3  ;;  %686 = vmatprep.subr.mxu0 %v542_v4 }
  0x4f   : > { %687 = vmatpush3.msra.mxu0 %v526_v5 }
  0x50   : > { %688 = vmatprep.subr.mxu0 %v541_v6 }
  0x51   : > { %689 = vmatpush3.msra.mxu0 %v525_v7 }
  0x52   : > { %690 = vmatprep.subr.mxu0 %v540_v8 }
  0x53   : > { %691 = vmatpush3.msra.mxu0 %v524_v9 }
  0x54   : > { %692 = vmatprep.subr.mxu0 %v539_v10 }
  0x55   : > { %693 = vmatpush3.msra.mxu0 %v523_v11 }
  0x56   : > { %694 = vmatprep.subr.mxu0 %v538_v12 }
  0x57   : > { %695 = vmatpush3.msra.mxu0 %v522_v13 }
  0x58   : > { %696 = vmatprep.subr.mxu0 %v537_v14 }
  0x59   : > { %697 = vmatpush3.msra.mxu0 %v521_v15 }
  0x5a   : > { %698 = vmatprep.subr.mxu0 %v536_v16 }
  0x5b   : > { %699 = vmatpush3.msra.mxu0 %v520_v17 }
  0x5c   : > { %700 = vmatprep.subr.mxu0 %v535_v18 }
  0x5d   : > { %701 = vmatpush3.msra.mxu0 %v519_v19 }
  0x5e   : > { %702 = vmatprep.subr.mxu0 %v534_v20 }
  0x5f   : > { %703 = vmatpush3.msra.mxu0 %v518_v21 }
  0x60   : > { %704 = vmatprep.subr.mxu0 %v533_v22 }
  0x61   : > { %705 = vmatpush3.msra.mxu0 %v517_v23 }
  0x62   : > { %706 = vmatprep.subr.mxu0 %v532_v24 }
  0x63   : > { %707 = vmatpush3.msra.mxu0 %v516_v25 }
  0x64   : > { %708 = vmatprep.subr.mxu0 %v531_v26 }
  0x65   : > { %709 = vmatpush3.msra.mxu0 %v515_v27 }
  0x66   : > { %710 = vmatprep.subr.mxu0 %v530_v28 }
  0x67   : > { %711 = vmatpush3.msra.mxu0 %v514_v29 }
  0x68   : > { %712 = vmatprep.subr.mxu0 %v529_v30 }
  0x69   : > { %713 = vmatpush3.msra.mxu0 %v513_v31 }
  0x6a   : > { %714 = vmatprep.subr.mxu0 %v528_v32 }
  0x6b   : > { %715 = vmatpush3.msra.mxu0 %v512_v33 }
  0x6c   : > { %716 = vmatprep.subr.mxu0 %v527_v34 }
  0x6d   : > { %717 = vmatpush3.msra.mxu0 %v511_v35 }
 0x10d   : > { %v433_v43 = vpop.f32.mrf.mxu0 }
 0x10e   : > { %v504_v44 = vpop.f32.mrf.mxu1  ;;  %v434_v45 = vadd.f32 %v433_v43, %v360_v41 }
 0x10f   : > { %v435_v46 = vpop.f32.mrf.mxu0 }
 0x110   : > { %v436_v47 = vadd.f32 %v435_v46, %v364_v42  ;;  %v505_v48 = vadd.f32 %v504_v44, %v434_v45  ;;  %v506_v49 = vpop.f32.mrf.mxu1 }
 0x112   : > { %v507_v50 = vadd.f32 %v506_v49, %v436_v47  ;;  %v509_v52 = vmax.f32 %v505_v48, 0.0 }
 0x114   : > { %v510_v51 = vmax.f32 %v507_v50, 0.0 }
 0x116   : > { %614 = vmatprep.mubr.f32.mxu0 %v510_v51 }
 0x117   : > { %615 = vmatmul.mubr.f32.vlgmr.msra.gmra.mxu0 %v509_v52 }
 0x1d7   : > { %v718_v53 = vpop.f32.mrf.mxu0 }
 0x1d9   : > { %v719_v55 = vpop.f32.mrf.mxu0 }
 0x1da   : > { %v720_v56 = vadd.f32 %v719_v55, %v718_v53 }
 0x1dc   : > { %v617_v57 = vadd.f32 %v720_v56, %v682_v54 }
 0x1de   : > { %620 = vst [vmem:[%s222_s30] sm:$0xff] %v617_v57 }
 0x1df PF: > { %s15_s18 = sadd.s32 1, %s735_s18  }
 0x1e0   : > { %p12_p4 = scmp.ge.s32.totalorder %s15_s18, 4  }
 0x1e2   :  { %14 = sbr.rel (!%p12_p4) target bundleno = 1 (0x1), region = 70 }

</bundles_post_ra>
